<compile_context>
chip_gen: v7x
topology: tpu7x:2x2x1
jax: 0.10.0
libtpu: 0.0.40
codegen_flags: <defaults>
</compile_context>

<pallas_src>
import functools

import jax
import jax.numpy as jnp
from jax.experimental import pallas as pl
from jax.experimental.pallas import tpu as pltpu


def _round_up(n, m):
    return (n + m - 1) // m * m


def _vmem_budget_bytes():
    """Per-generation scoped-VMEM budget: ~3/4 of physical VMEM.

    ~48 MiB on v7x (64 MiB/core), ~96 MiB on v5e / v6e (128 MiB).
    """
    cap = 64 * 1024 * 1024
    try:
        cap = int(pltpu.get_tpu_info().vmem_capacity_bytes)
    except Exception:
        pass
    budget = (cap * 3) // 4
    return max(32 * 1024 * 1024, min(budget, 112 * 1024 * 1024))


# ------------------------------------------------------------------ kernels --

def _nlinear_shared_kernel(x_ref, w_ref, b_ref, o_ref, *, mm_dtype):
    """individual=False.  One (batch*channel) lane tile per grid step.

    x_ref: (W, n_blk)  input columns, one column per (batch, channel) pair
    w_ref: (F, W)      shared time->forecast weight (mm_dtype), VMEM-resident
    b_ref: (F, 1)      bias (f32)
    o_ref: (F, n_blk)  forecast tile
    """
    x = x_ref[...].astype(jnp.float32)                   # (W, n_blk)
    x_last = x[-1:, :]                                    # (1, n_blk) f32
    xc = x - x_last                                       # normalise in f32
    y = jnp.dot(w_ref[...], xc.astype(mm_dtype),          # MXU: window contracted,
                preferred_element_type=jnp.float32)        # batch*channel on lanes
    o_ref[...] = (y + b_ref[...] + x_last).astype(o_ref.dtype)


def _nlinear_individual_kernel(x_ref, w_ref, b_ref, o_ref, *, mul_dtype):
    """individual=True.  Per-channel weights, channels kept lane-dense.

    x_ref: (1, W, c_blk)      input window tile (x dtype, typically f32)
    w_ref: (f_blk, W, c_blk)  per-channel weights, channel-minor (mm_dtype)
    b_ref: (f_blk, c_blk)     bias (f32)
    o_ref: (1, f_blk, c_blk)
    """
    f32 = jnp.float32
    mul_in_f32 = jnp.dtype(mul_dtype) == jnp.dtype(f32)
    W = x_ref.shape[1]

    x = x_ref[0].astype(f32)                              # (W, c_blk), small
    x_last = x[-1:, :]                                     # (1, c_blk), exact f32 add-back
    xc = x - x_last                                        # normalise in f32 BEFORE bf16 cast
    xm = xc if mul_in_f32 else xc.astype(mul_dtype)

    # Window contraction accumulated in 8-sublane chunks: only an
    # (f_blk, 8, c_blk) product is ever live, never a full (f_blk, W, c_blk)
    # f32 intermediate.  Static python loop (W is known at trace time), so all
    # ref slices are static, sublane-aligned views.
    acc = b_ref[...] + x_last                              # (f_blk, c_blk) f32
    for w0 in range(0, W, 8):
        n = min(8, W - w0)
        wch = w_ref[:, w0:w0 + n, :]                       # (f_blk, n, c_blk)
        if mul_in_f32:
            prod = wch.astype(f32) * xm[None, w0:w0 + n, :]
        else:
            # bf16 multiply (v6e/v7x bf16 VALUs), f32 accumulation.
            prod = (wch * xm[None, w0:w0 + n, :]).astype(f32)
        acc = acc + jnp.sum(prod, axis=1)
    o_ref[0] = acc.astype(o_ref.dtype)


# --------------------------------------------------------------- init/apply --

def ltsf_nlinear_init(weight, bias, *, matmul_dtype=None):
    """One-time parameter preprocessing (transpose / pad / cast).

    weight: (F, W)     shared Linear      (individual=False), bias (F,)
            (C, F, W)  per-channel Linears (individual=True),  bias (C, F)
    matmul_dtype: dtype of the streamed weights / products (e.g. jnp.bfloat16
                  to halve weight HBM traffic on v6e/v7x; keep f32 on v5e).
    Call once at model init and reuse the returned params per forward.
    """
    mm_dtype = jnp.dtype(matmul_dtype) if matmul_dtype is not None else jnp.dtype(weight.dtype)
    budget = _vmem_budget_bytes()

    if weight.ndim == 2:                                   # shared Linear
        F, W = weight.shape
        return dict(individual=False, F=F, W=W, mm_dtype=mm_dtype, vmem=budget,
                    w=weight.astype(mm_dtype),
                    b=bias.astype(jnp.float32).reshape(F, 1))

    C, F, W = weight.shape                                 # per-channel Linears
    # Channel (lane) tile: keep C un-padded when small (LTSF C=7/21) and
    # accept masked stores; tile large C in 256-lane blocks.
    if C <= 256:
        c_blk, C_pad = C, C
    else:
        c_blk = 256
        C_pad = _round_up(C, c_blk)
    # Forecast (sublane) tile from the VMEM budget: double-buffered weight
    # tile <= ~half the budget.  Multiple of 16 so bf16 outputs still store
    # full packed sublanes.
    f_cap = (budget // 2) // max(1, 2 * W * c_blk * mm_dtype.itemsize)
    f_blk = min(_round_up(F, 16), max(16, (f_cap // 16) * 16))
    F_pad = _round_up(F, f_blk)

    wt = jnp.transpose(weight, (1, 2, 0))                  # (F, W, C) channel-minor
    wt = jnp.pad(wt, ((0, F_pad - F), (0, 0), (0, C_pad - C))).astype(mm_dtype)
    bt = jnp.pad(bias.T.astype(jnp.float32),
                 ((0, F_pad - F), (0, C_pad - C)))         # (F_pad, C_pad)
    return dict(individual=True, F=F, W=W, C=C, F_pad=F_pad, C_pad=C_pad,
                f_blk=f_blk, c_blk=c_blk, mm_dtype=mm_dtype, vmem=budget,
                w=wt, b=bt)


def _shared_forward(x, params):
    B, W, C = x.shape
    F = params["F"]
    mm_dtype = params["mm_dtype"]
    budget = params["vmem"]
    out_dtype = x.dtype
    N = B * C

    # Fold batch and channels onto the lane axis: (B, W, C) -> (W, B*C).
    # One XLA transpose of x; far cheaper than zero-padding a small C to 128,
    # and each grid step becomes one large MXU matmul over many batch rows.
    x2 = jnp.transpose(x, (1, 0, 2)).reshape(W, N)

    # Lane tile from the VMEM budget (double-buffered x / out tiles, resident
    # weight + bias, in-kernel f32 temporaries).
    fixed = 2 * F * W * mm_dtype.itemsize + 8 * F
    per_lane = 2 * W * x.dtype.itemsize + 2 * F * out_dtype.itemsize + 4 * (W + F)
    n_cap = (budget * 3 // 4 - fixed) // max(1, per_lane)
    n_cap = max(128, min(8192, n_cap))
    n_cap = (n_cap // 128) * 128
    if N <= n_cap:
        n_blk, N_pad = N, N                                # single full-width block, no pad
    else:
        n_blk = n_cap
        N_pad = _round_up(N, n_blk)
        x2 = jnp.pad(x2, ((0, 0), (0, N_pad - N)))

    out = pl.pallas_call(
        functools.partial(_nlinear_shared_kernel, mm_dtype=mm_dtype),
        out_shape=jax.ShapeDtypeStruct((F, N_pad), out_dtype),
        grid=(N_pad // n_blk,),
        in_specs=[
            pl.BlockSpec((W, n_blk), lambda n: (0, n)),
            pl.BlockSpec((F, W), lambda n: (0, 0)),        # resident: block index never changes
            pl.BlockSpec((F, 1), lambda n: (0, 0)),
        ],
        out_specs=pl.BlockSpec((F, n_blk), lambda n: (0, n)),
        compiler_params=pltpu.CompilerParams(
            dimension_semantics=("parallel",),
            vmem_limit_bytes=budget),
    )(x2, params["w"], params["b"])

    out = out[:, :N].reshape(F, B, C)
    return jnp.transpose(out, (1, 0, 2))                   # (B, F, C)


def _individual_forward(x, params):
    B, W, C = x.shape
    F, F_pad, C_pad = params["F"], params["F_pad"], params["C_pad"]
    f_blk, c_blk = params["f_blk"], params["c_blk"]
    mm_dtype = params["mm_dtype"]
    budget = params["vmem"]
    out_dtype = x.dtype

    x_p = x
    if C_pad != C:
        x_p = jnp.pad(x, ((0, 0), (0, 0), (0, C_pad - C)))

    # Batch innermost: the (f_blk, W, c_blk) weight tile keeps the same block
    # index across all B steps, so Pallas skips its re-DMA (weight streaming
    # is the dominant HBM traffic of this branch).
    grid = (F_pad // f_blk, C_pad // c_blk, B)
    # TODO(synk): if profiling shows the weight DMA exposed on 128 MiB parts,
    # add pipeline_mode=pl.Buffered(3) to the weight BlockSpec.
    out = pl.pallas_call(
        functools.partial(_nlinear_individual_kernel, mul_dtype=mm_dtype),
        out_shape=jax.ShapeDtypeStruct((B, F_pad, C_pad), out_dtype),
        grid=grid,
        in_specs=[
            pl.BlockSpec((1, W, c_blk), lambda f, c, b: (b, 0, c)),
            pl.BlockSpec((f_blk, W, c_blk), lambda f, c, b: (f, 0, c)),
            pl.BlockSpec((f_blk, c_blk), lambda f, c, b: (f, c)),
        ],
        out_specs=pl.BlockSpec((1, f_blk, c_blk), lambda f, c, b: (b, f, c)),
        compiler_params=pltpu.CompilerParams(
            dimension_semantics=("parallel", "parallel", "parallel"),
            vmem_limit_bytes=budget),
    )(x_p, params["w"], params["b"])
    return out[:, :F, :C]


def ltsf_nlinear_apply(x, params):
    """Forward pass.  x: (B, W, C)  ->  (B, F, C) in x.dtype."""
    if params["individual"]:
        return _individual_forward(x, params)
    return _shared_forward(x, params)


def ltsf_nlinear(x, weight, bias, *, matmul_dtype=None):
    """Convenience: init + apply in one call (prefer init once at model setup)."""
    return ltsf_nlinear_apply(x, ltsf_nlinear_init(weight, bias, matmul_dtype=matmul_dtype))


# ---------------------------------------------------------------- reference --

def reference_nlinear(x, weight, bias):
    """Pure-JAX reference of the PyTorch forward (both branches)."""
    seq_last = x[:, -1:, :]
    xc = x - seq_last
    if weight.ndim == 2:   # shared Linear
        y = jnp.einsum('fw,bwc->bfc', weight, xc) + bias[None, :, None]
    else:                  # per-channel Linears
        y = jnp.einsum('cfw,bwc->bfc', weight, xc) + bias.T[None, :, :]
    return y + seq_last


if __name__ == "__main__":
    B, window_size, forecast_size, channels = 2, 8, 4, 4
    key = jax.random.PRNGKey(0)
    kx, kb1, kw2, kb2 = jax.random.split(key, 4)
    x = jax.random.normal(kx, (B, window_size, channels), dtype=jnp.float32)

    # individual=False: shared weight = (1/W) * ones (as in __init__), random bias.
    w_shared = jnp.full((forecast_size, window_size), 1.0 / window_size, jnp.float32)
    b_shared = 0.1 * jax.random.normal(kb1, (forecast_size,), dtype=jnp.float32)

    # individual=True: per-channel random weights / biases.
    w_ind = 0.1 * jax.random.normal(
        kw2, (channels, forecast_size, window_size), dtype=jnp.float32)
    b_ind = 0.1 * jax.random.normal(kb2, (channels, forecast_size), dtype=jnp.float32)

    ok = True

    # Shared Linear (MXU path).  Tolerance allows for reduced-precision f32
    # MXU passes relative to the XLA einsum reference.
    p_shared = ltsf_nlinear_init(w_shared, b_shared)
    out = jax.block_until_ready(ltsf_nlinear_apply(x, p_shared))
    assert out.shape == (B, forecast_size, channels)
    ok = ok and bool(jnp.allclose(out, reference_nlinear(x, w_shared, b_shared),
                                  atol=5e-3, rtol=5e-3))

    # Per-channel Linears (VPU path) -- plain f32 math.
    p_ind = ltsf_nlinear_init(w_ind, b_ind)
    out = jax.block_until_ready(ltsf_nlinear_apply(x, p_ind))
    assert out.shape == (B, forecast_size, channels)
    ok = ok and bool(jnp.allclose(out, reference_nlinear(x, w_ind, b_ind),
                                  atol=1e-5, rtol=1e-5))

    # bf16 weights / products (normalisation, accumulation and add-back in f32).
    out_bf16 = jax.block_until_ready(
        ltsf_nlinear(x, w_ind, b_ind, matmul_dtype=jnp.bfloat16))
    ok = ok and bool(jnp.allclose(out_bf16, reference_nlinear(x, w_ind, b_ind),
                                  atol=5e-2, rtol=5e-2))

    if ok:
        print("KERNEL_OK")
</pallas_src>

<mosaic_0001>
module attributes {stable_mosaic.version = 11 : i64} {
  func.func @_nlinear_shared_kernel(%arg0: i32, %arg1: memref<8x8xf32, #tpu.memory_space<vmem>>, %arg2: memref<4x8xf32, #tpu.memory_space<vmem>>, %arg3: memref<4x1xf32, #tpu.memory_space<vmem>>, %arg4: memref<4x8xf32, #tpu.memory_space<vmem>>) attributes {dimension_semantics = [#tpu.dimension_semantics<parallel>], iteration_bounds = array<i64: 1>, scalar_prefetch = 0 : i64, scratch_operands = 0 : i64, tpu.core_type = #tpu.core_type<tc>, window_params = [{transform_indices = @transform_0, window_bounds = array<i64: 8, 8>}, {pipeline_mode = #tpu.pipeline_mode<synchronous>, transform_indices = @transform_1, window_bounds = array<i64: 4, 8>}, {pipeline_mode = #tpu.pipeline_mode<synchronous>, transform_indices = @transform_2, window_bounds = array<i64: 4, 1>}, {transform_indices = @transform_3, window_bounds = array<i64: 4, 8>}]} {
    %c0 = arith.constant 0 : index
    %c0_0 = arith.constant 0 : index
    %0 = vector.load %arg1[%c0, %c0_0] : memref<8x8xf32, #tpu.memory_space<vmem>>, vector<8x8xf32>
    %1 = vector.extract_strided_slice %0 {offsets = [7, 0], sizes = [1, 8], strides = [1, 1]} : vector<8x8xf32> to vector<1x8xf32>
    %2 = vector.broadcast %1 : vector<1x8xf32> to vector<8x8xf32>
    %3 = arith.subf %0, %2 : vector<8x8xf32>
    %c0_1 = arith.constant 0 : index
    %c0_2 = arith.constant 0 : index
    %4 = vector.load %arg2[%c0_1, %c0_2] : memref<4x8xf32, #tpu.memory_space<vmem>>, vector<4x8xf32>
    %cst = arith.constant dense<0.000000e+00> : vector<4x8xf32>
    %5 = tpu.matmul %4, %3, %cst {dimension_numbers = #tpu.dot_dimension_numbers<[1], [0], [0], [1], [0, 0, 1, 1], [], []>} : vector<4x8xf32>, vector<8x8xf32>, vector<4x8xf32> -> vector<4x8xf32>
    %c0_3 = arith.constant 0 : index
    %c0_4 = arith.constant 0 : index
    %6 = vector.load %arg3[%c0_3, %c0_4] : memref<4x1xf32, #tpu.memory_space<vmem>>, vector<4x1xf32>
    %7 = vector.broadcast %6 : vector<4x1xf32> to vector<4x8xf32>
    %8 = arith.addf %5, %7 : vector<4x8xf32>
    %9 = vector.broadcast %1 : vector<1x8xf32> to vector<4x8xf32>
    %10 = arith.addf %8, %9 : vector<4x8xf32>
    %c0_5 = arith.constant 0 : index
    %c0_6 = arith.constant 0 : index
    %11 = vector.load %arg4[%c0_5, %c0_6] : memref<4x8xf32, #tpu.memory_space<vmem>>, vector<4x8xf32>
    tpu.vector_store %arg4[%c0_5, %c0_6], %10 {strides = array<i32>} : memref<4x8xf32, #tpu.memory_space<vmem>>, vector<4x8xf32>,
    return
  }
  func.func @transform_0(%arg0: i32) -> (i32, i32) {
    %c0_i32 = arith.constant 0 : i32
    %c0_i32_0 = arith.constant 0 : i32
    return %c0_i32, %arg0 : i32, i32
  }
  func.func @transform_1(%arg0: i32) -> (i32, i32) {
    %c0_i32 = arith.constant 0 : i32
    %c0_i32_0 = arith.constant 0 : i32
    %c0_i32_1 = arith.constant 0 : i32
    return %c0_i32, %c0_i32_0 : i32, i32
  }
  func.func @transform_2(%arg0: i32) -> (i32, i32) {
    %c0_i32 = arith.constant 0 : i32
    %c0_i32_0 = arith.constant 0 : i32
    %c0_i32_1 = arith.constant 0 : i32
    return %c0_i32, %c0_i32_0 : i32, i32
  }
  func.func @transform_3(%arg0: i32) -> (i32, i32) {
    %c0_i32 = arith.constant 0 : i32
    %c0_i32_0 = arith.constant 0 : i32
    return %c0_i32, %arg0 : i32, i32
  }
}

</mosaic_0001>

<bundles_post_ra>
// kernel: tpu_custom_call.1
= control target key start
LH: loop header
LB: loop body
LE: loop exit
PB: predicated region body
PF: predicated region fallthrough
CT: control target
= control target key end

     0   :  { %8 = vsyncpa [#allocation3], 0  ;;  %s249_s0 = inlined_call_operand.hbm [shape: f32[8,8], index: 0, kind: input, shape index: {}]   ;;  %s250_s1 = inlined_call_operand.vmem [shape: f32[4,8], index: 1, kind: input, shape index: {}]   ;;  %s251_s2 = inlined_call_operand.vmem [shape: f32[4,1], index: 2, kind: input, shape index: {}]   ;;  %s252_s3 = inlined_call_operand.hbm [shape: f32[4,8], index: 3, kind: output, shape index: {}]  }
   0x1   :  { %9 = vsyncpa [#allocation4], 0  ;;  %s194_s12 = smov [#allocation2]   ;;  %s146_s16 = scalar_lea.hbm %s249_s0, 128 }
   0x2   :  { %s16_s13 = sshll.u32 %s194_s12, 4  ;;  %p147_p0 = scmp.ne.s32.totalorder %s249_s0, %s146_s16  ;;  %s17_s13 = int_to_ptr.vmem [resolvable:$true] %s16_s13 }
   0x3   :  { %p150_p1 = scmp.lt.u32.totalorder %s146_s16, %s249_s0 }
   0x5   :  { %p152_p2 = pnand %p150_p1, %p147_p0 }
   0x7   :  { %155 = shalt.err (!%p152_p2)
}
   0x8   :  { %s156_s21 = scalar_lea.vmem %s17_s13, 128  ;;  %p161_p4 = scmp.lt.s32.totalorder %s17_s13, %s17_s13 }
   0x9   :  { %p157_p3 = scmp.ne.s32.totalorder %s17_s13, %s156_s21  ;;  %p162_p5 = scmp.lt.s32.totalorder %s156_s21, %s156_s21 }
   0xb   :  { %p163_p6 = por %p162_p5, %p161_p4 }
   0xd   :  { %p164_p7 = pnand %p163_p6, %p157_p3 }
   0xf   :  { %167 = shalt.err (!%p164_p7)
}
  0x10   :  { %19 = dma.hbm_to_vmem [thread:$0]  %s249_s0, 128, %s17_s13, [#allocation3]  }
  0x11   :  { %190 = dma.done.wait [#allocation3], 128  }
  0x12   :  { %191 = vsyncadd [#allocation3], 4294967168  ;;  %v28_v0 = vlaneseq  ;;  %v195_v1 = vmov 0.0   ;;  %vm196_vm0 = vmmov 0   ;;  %v197_v3 = vmov 0   ;;  %v27_v5 = vld [vmem:[#allocation2] sm:$0xff] }
  0x13   :  { %135 = vmatprep.subr.mxu0 %v195_v1  ;;  %137 = vmatprep.mubr.msk.f32.mxu0 %vm196_vm0, %v195_v1  ;;  %v34_v6 = vld [vmem:[%s251_s2] sm:$0xf]  ;;  %vm40_vm1 = vcmask 64512   ;;  %s198_s27 = smov [#allocation5]   ;;  %vm115_vm2 = vcmask 60416  }
  0x14   :  { %v29_v2 = vshrl.u32 %v28_v0, 7  ;;  %145 = vset.pattern.permute.xlu0 %v197_v3  ;;  %v33_v9 = vld [vmem:[%s250_s1] sm:$0xf]  ;;  %s123_s28 = sshll.u32 %s198_s27, 4  ;;  %s124_s28 = int_to_ptr.vmem [resolvable:$true] %s123_s28 }
  0x15   :  { %37 = vperm.xlu0 %145, %v34_v6   ;;  %s168_s2 = scalar_lea.vmem %s124_s28, 64  ;;  %p173_p9 = scmp.lt.s32.totalorder %s124_s28, %s124_s28 }
  0x16   :  { %v30_v4 = vsub.s32 7, %v29_v2  ;;  %p169_p8 = scmp.ne.s32.totalorder %s124_s28, %s168_s2  ;;  %p174_p10 = scmp.lt.s32.totalorder %s168_s2, %s168_s2 }
  0x18   :  { %v31_v7 = vrot.slane %v27_v5, %v30_v4  ;;  %p175_p11 = por %p174_p10, %p173_p9 }
  0x1a   :  { %v32_v8 = vsub.f32 %v27_v5, %v31_v7  ;;  %p176_p12 = pnand %p175_p11, %p169_p8 }
  0x1c   :  { %136 = vmatpush3.msra.mxu0 %v32_v8 }
  0x1d   :  { %138 = vmatmul.mubr.msk.f32.vlgmr.msra.gmra.mrb[0].mxu0 %vm40_vm1, %v33_v9 }
  0x94   :  { %v38_v10 = vpop.permute.xlu0 %37 }
  0xf0   :  { %v110_v11 = vpop.f32.mrb[0].mxu0 }
  0xf1   :  { %v111_v12 = vadd.f32 %v110_v11, %v38_v10  ;;  %v139_v13 = vpop.f32.mrb[1].mxu0 }
  0xf3   :  { %v114_v14 = vadd.f32 %v111_v12, %v31_v7 }
  0xf5   :  { %116 = vst.msk [vmem:[#allocation5] sm:$0xf] %vm115_vm2, %v114_v14 }
  0xf6   :  { %179 = shalt.err (!%p176_p12)
}
  0xf7   :  { %s180_s30 = scalar_lea.hbm %s252_s3, 64 }
  0xf8   :  { %p181_p13 = scmp.ne.s32.totalorder %s252_s3, %s180_s30  ;;  %p184_p0 = scmp.lt.u32.totalorder %s180_s30, %s252_s3 }
  0xfa   :  { %p186_p1 = pnand %p184_p0, %p181_p13 }
  0xfc   :  { %189 = shalt.err (!%p186_p1)
}
  0xfd   :  { %126 = dma.vmem_to_hbm [thread:$0]  %s124_s28, 64, %s252_s3, [#allocation4]  }
  0xfe   :  { %192 = dma.done.wait [#allocation4], 64  }
  0xff   :  { %193 = vsyncadd [#allocation4], 4294967232 }
 0x100   :  { %130 = vsyncpa [#allocation3], 1 }
 0x101   :  { %131 = vsyncpa [#allocation4], 1 }

</bundles_post_ra>
